<compile_context>
chip_gen: v6e
topology: v6e:2x2x1
jax: 0.10.0
libtpu: 0.0.40
codegen_flags: <defaults>
</compile_context>

<pallas_src>
import jax
import jax.numpy as jnp
from jax.experimental import pallas as pl
from jax.experimental.pallas import tpu as pltpu


def _cdiv(a, b):
    return -(-a // b)


def _make_bce_kernel(B, C, tile_b, tile_c, binary_targets):
    mask_rows = (B % tile_b) != 0
    mask_cols = (C % tile_c) != 0

    def kernel(x_ref, t_ref, o_ref):
        # Upcast in-kernel; inputs stream in their native dtype.
        x = x_ref[...].astype(jnp.float32)
        t = t_ref[...].astype(jnp.float32)

        if mask_rows or mask_cols:
            valid = None
            if mask_rows:
                rows = jax.lax.broadcasted_iota(jnp.int32, (tile_b, tile_c), 0)
                valid = rows + pl.program_id(0) * tile_b < B
            if mask_cols:
                cols = jax.lax.broadcasted_iota(jnp.int32, (tile_b, tile_c), 1)
                vc = cols + pl.program_id(1) * tile_c < C
                valid = vc if valid is None else jnp.logical_and(valid, vc)
            # x=1, t=1 makes the summand exactly 0, so the out-of-bounds tail
            # of the ragged last blocks contributes nothing (and any garbage /
            # NaN there is squashed before the logs ever see it).
            x = jnp.where(valid, x, 1.0)
            t = jnp.where(valid, t, 1.0)

        if binary_targets:
            # One transcendental per element (only valid for t in {0, 1}).
            term = jnp.log(jnp.maximum(jnp.where(t > 0.5, x, 1.0 - x), 1e-10))
        else:
            log_p = jnp.log(jnp.maximum(x, 1e-10))
            log_q = jnp.log(jnp.maximum(1.0 - x, 1e-10))
            # t*log_p + (1-t)*log_q == log_q + t*(log_p - log_q)
            term = log_q + t * (log_p - log_q)

        # Only a sublane-direction reduce per step; the single tiny cross-lane
        # / cross-step reduce happens in the wrapper.
        o_ref[...] = jnp.sum(term, axis=0, keepdims=True)[None, None]

    return kernel


def bce_loss(inputs, targets, *, target_block_bytes=8 * 1024 * 1024,
             binary_targets=False):
    """-mean_over_dim0(sum_over_dim1(...)) — matches the torch module."""
    assert inputs.shape == targets.shape
    assert inputs.ndim >= 2
    # torch: sum over dim 1, then mean over everything that remains.
    divisor = inputs.size // inputs.shape[1]

    x, t = inputs, targets
    if x.ndim != 2:
        # TODO(synk): >2-D inputs fall back to a reshape (may relayout); the
        # canonical 2-D case is blocked natively with zero extra copies.
        last = x.shape[-1]
        x = x.reshape(-1, last)
        t = t.reshape(-1, last)
    B, C = x.shape

    itemsize = max(jnp.dtype(x.dtype).itemsize, jnp.dtype(t.dtype).itemsize)

    # ---- tile selection -----------------------------------------------------
    # Column tile: take the full row (single column block) whenever 8 rows x C
    # fit the per-input block budget; otherwise tile C in 128-lane multiples
    # and mask the ragged column tail in-kernel.
    if 8 * C * itemsize <= target_block_bytes:
        tile_c = C
    else:
        tile_c = max(128, (target_block_bytes // (8 * itemsize)) // 128 * 128)
    grid_c = _cdiv(C, tile_c)

    # Row tile: as many rows as fit the ~8 MiB per-input budget, multiple of 8.
    if B <= 8:
        tile_b = B
    else:
        tile_b = target_block_bytes // (tile_c * itemsize)
        tile_b = max(8, (tile_b // 8) * 8)
        tile_b = min(tile_b, (B // 8) * 8)
    grid_b = _cdiv(B, tile_b)

    # 2 inputs x 2 pipeline buffers + headroom, capped under v7x's 64 MiB/TC.
    block_bytes = tile_b * tile_c * (jnp.dtype(x.dtype).itemsize
                                     + jnp.dtype(t.dtype).itemsize)
    vmem_limit = max(32 * 1024 * 1024,
                     min(48 * 1024 * 1024, 2 * block_bytes + 16 * 1024 * 1024))

    kernel = _make_bce_kernel(B, C, tile_b, tile_c, binary_targets)

    partials = pl.pallas_call(
        kernel,
        out_shape=jax.ShapeDtypeStruct((grid_b, grid_c, 1, tile_c), jnp.float32),
        grid_spec=pltpu.PrefetchScalarGridSpec(
            num_scalar_prefetch=0,
            grid=(grid_b, grid_c),
            in_specs=[
                pl.BlockSpec((tile_b, tile_c), lambda i, j: (i, j)),
                pl.BlockSpec((tile_b, tile_c), lambda i, j: (i, j)),
            ],
            out_specs=pl.BlockSpec((1, 1, 1, tile_c), lambda i, j: (i, j, 0, 0)),
        ),
        compiler_params=pltpu.CompilerParams(
            # Independent per-tile partials -> shardable across v7x's 2 TCs.
            dimension_semantics=("parallel", "parallel"),
            vmem_limit_bytes=vmem_limit,
        ),
    )(x, t)

    total = jnp.sum(partials)
    return -(total / jnp.float32(divisor))


def _reference(x, t):
    return -jnp.mean(
        jnp.sum(
            t * jnp.log(jnp.maximum(x, 1e-10))
            + (1.0 - t) * jnp.log(jnp.maximum(1.0 - x, 1e-10)),
            axis=1,
        )
    )


if __name__ == "__main__":
    key = jax.random.PRNGKey(0)

    ok = True
    cases = [
        ((8, 32), jnp.float32),     # tiny, single block
        ((64, 128), jnp.float32),   # lane-aligned
        ((50, 200), jnp.float32),   # ragged rows -> in-kernel masking path
        ((16, 384), jnp.bfloat16),  # bf16 input -> in-kernel upcast path
    ]
    for (B, C), dtype in cases:
        key, k1, k2 = jax.random.split(key, 3)
        # Probabilities in (0, 1) and binary targets, as BCE expects.
        x = jax.nn.sigmoid(jax.random.normal(k1, (B, C), dtype=jnp.float32))
        x = x.astype(dtype)
        t = (jax.random.uniform(k2, (B, C)) > 0.5).astype(jnp.float32)

        ref = _reference(x.astype(jnp.float32), t)

        loss = bce_loss(x, t)
        jax.block_until_ready(loss)
        if not jnp.allclose(loss, ref, rtol=1e-5, atol=1e-5):
            ok = False
            print("MISMATCH", (B, C), dtype, loss, ref)

        # Binary-target fast path (1 log/element) — valid here since t in {0,1}.
        loss_b = bce_loss(x, t, binary_targets=True)
        jax.block_until_ready(loss_b)
        if not jnp.allclose(loss_b, ref, rtol=1e-5, atol=1e-5):
            ok = False
            print("MISMATCH(binary)", (B, C), dtype, loss_b, ref)

    assert ok
    print("KERNEL_OK")
</pallas_src>

<mosaic_0001>
module attributes {stable_mosaic.version = 11 : i64} {
  func.func @kernel(%arg0: i32, %arg1: i32, %arg2: memref<8x32xf32, #tpu.memory_space<vmem>>, %arg3: memref<8x32xf32, #tpu.memory_space<vmem>>, %arg4: memref<1x1x1x32xf32, #tpu.memory_space<vmem>>) attributes {dimension_semantics = [#tpu.dimension_semantics<parallel>, #tpu.dimension_semantics<parallel>], iteration_bounds = array<i64: 1, 1>, scalar_prefetch = 0 : i64, scratch_operands = 0 : i64, tpu.core_type = #tpu.core_type<tc>, window_params = [{transform_indices = @transform_0, window_bounds = array<i64: 8, 32>}, {transform_indices = @transform_1, window_bounds = array<i64: 8, 32>}, {transform_indices = @transform_2, window_bounds = array<i64: 1, 1, 1, 32>}]} {
    %c0 = arith.constant 0 : index
    %c0_0 = arith.constant 0 : index
    %0 = vector.load %arg2[%c0, %c0_0] : memref<8x32xf32, #tpu.memory_space<vmem>>, vector<8x32xf32>
    %c0_1 = arith.constant 0 : index
    %c0_2 = arith.constant 0 : index
    %1 = vector.load %arg3[%c0_1, %c0_2] : memref<8x32xf32, #tpu.memory_space<vmem>>, vector<8x32xf32>
    %cst = arith.constant 1.000000e-10 : f32
    %2 = vector.broadcast %cst : f32 to vector<8x32xf32>
    %3 = arith.maximumf %0, %2 : vector<8x32xf32>
    %4 = math.log %3 : vector<8x32xf32>
    %cst_3 = arith.constant 1.000000e+00 : f32
    %5 = vector.broadcast %cst_3 : f32 to vector<8x32xf32>
    %6 = arith.subf %5, %0 : vector<8x32xf32>
    %cst_4 = arith.constant 1.000000e-10 : f32
    %7 = vector.broadcast %cst_4 : f32 to vector<8x32xf32>
    %8 = arith.maximumf %6, %7 : vector<8x32xf32>
    %9 = math.log %8 : vector<8x32xf32>
    %10 = arith.subf %4, %9 : vector<8x32xf32>
    %11 = arith.mulf %1, %10 : vector<8x32xf32>
    %12 = arith.addf %9, %11 : vector<8x32xf32>
    %cst_5 = arith.constant dense<0.000000e+00> : vector<32xf32>
    %13 = vector.multi_reduction <add>, %12, %cst_5 [0] : vector<8x32xf32> to vector<32xf32>
    %14 = vector.shape_cast %13 : vector<32xf32> to vector<1x32xf32>
    %15 = vector.shape_cast %14 : vector<1x32xf32> to vector<1x1x1x32xf32>
    %c0_6 = arith.constant 0 : index
    %c0_7 = arith.constant 0 : index
    %c0_8 = arith.constant 0 : index
    %c0_9 = arith.constant 0 : index
    %16 = vector.load %arg4[%c0_6, %c0_7, %c0_8, %c0_9] : memref<1x1x1x32xf32, #tpu.memory_space<vmem>>, vector<1x1x1x32xf32>
    tpu.vector_store %arg4[%c0_6, %c0_7, %c0_8, %c0_9], %15 {strides = array<i32>} : memref<1x1x1x32xf32, #tpu.memory_space<vmem>>, vector<1x1x1x32xf32>,
    return
  }
  func.func @transform_0(%arg0: i32, %arg1: i32) -> (i32, i32) {
    %c0_i32 = arith.constant 0 : i32
    return %arg0, %arg1 : i32, i32
  }
  func.func @transform_1(%arg0: i32, %arg1: i32) -> (i32, i32) {
    %c0_i32 = arith.constant 0 : i32
    return %arg0, %arg1 : i32, i32
  }
  func.func @transform_2(%arg0: i32, %arg1: i32) -> (i32, i32, i32, i32) {
    %c0_i32 = arith.constant 0 : i32
    %c0_i32_0 = arith.constant 0 : i32
    %c0_i32_1 = arith.constant 0 : i32
    return %arg0, %arg1, %c0_i32, %c0_i32_0 : i32, i32, i32, i32
  }
}

</mosaic_0001>

<bundles_post_ra>
// kernel: tpu_custom_call.1
= control target key start
LH: loop header
LB: loop body
LE: loop exit
PB: predicated region body
PF: predicated region fallthrough
CT: control target
= control target key end

     0   :  { %7 = vsyncpa [#allocation3], 0  ;;  %s174_s0 = inlined_call_operand.hbm [shape: f32[8,32], index: 0, kind: input, shape index: {}]   ;;  %s175_s1 = inlined_call_operand.hbm [shape: f32[8,32], index: 1, kind: input, shape index: {}]   ;;  %s176_s2 = inlined_call_operand.hbm [shape: f32[1,1,1,32], index: 2, kind: output, shape index: {}]  }
   0x1   :  { %8 = vsyncpa [#allocation6], 0 }
   0x2   :  { %9 = vsyncpa [#allocation4], 0  ;;  %s147_s9 = smov [#allocation2]   ;;  %s148_s11 = smov [#allocation5]  }
   0x3   :  { %s16_s10 = sshll.u32 %s147_s9, 4  ;;  %s26_s12 = sshll.u32 %s148_s11, 4  ;;  %s17_s10 = int_to_ptr.vmem [resolvable:$true] %s16_s10  ;;  %s27_s12 = int_to_ptr.vmem [resolvable:$true] %s26_s12 }
   0x4   :  { %s89_s13 = scalar_lea.vmem %s17_s10, 128  ;;  %p94_p1 = scmp.lt.s32.totalorder %s17_s10, %s17_s10 }
   0x5   :  { %p90_p0 = scmp.ne.s32.totalorder %s17_s10, %s89_s13  ;;  %p95_p2 = scmp.lt.s32.totalorder %s89_s13, %s89_s13 }
   0x7   :  { %p96_p3 = por %p95_p2, %p94_p1 }
   0x9   :  { %p97_p4 = pnand %p96_p3, %p90_p0 }
   0xb   :  { %100 = shalt.err (!%p97_p4)
}
   0xc   :  { %19 = dma.hbm_to_vmem [thread:$0]  %s174_s0, 128, %s17_s10, [#allocation3]  }
   0xd   :  { %s109_s16 = scalar_lea.vmem %s27_s12, 128  ;;  %p114_p6 = scmp.lt.s32.totalorder %s27_s12, %s27_s12 }
   0xe   :  { %p110_p5 = scmp.ne.s32.totalorder %s27_s12, %s109_s16  ;;  %p115_p7 = scmp.lt.s32.totalorder %s109_s16, %s109_s16 }
  0x10   :  { %p116_p8 = por %p115_p7, %p114_p6 }
  0x12   :  { %p117_p9 = pnand %p116_p8, %p110_p5 }
  0x14   :  { %120 = shalt.err (!%p117_p9)
}
  0x15   :  { %29 = dma.hbm_to_vmem [thread:$0]  %s175_s1, 128, %s27_s12, [#allocation6]  }
  0x16   :  { %141 = dma.done.wait [#allocation3], 128  }
  0x17   :  { %142 = vsyncadd [#allocation3], 4294967168 }
  0x18   :  { %143 = dma.done.wait [#allocation6], 128  }
  0x19   :  { %144 = vsyncadd [#allocation6], 4294967168  ;;  %v36_v0 = vld [vmem:[#allocation2] sm:$0xff]  ;;  %v37_v8 = vld [vmem:[#allocation5] sm:$0xff]  ;;  %vm48_vm0 = vcmask 261120   ;;  %s149_s0 = smov [#allocation7]  }
  0x1a   :  { %v38_v1 = vmax.f32 %v36_v0, 1e-10  ;;  %v41_v2 = vsub.f32 1.0, %v36_v0  ;;  %s64_s1 = sshll.u32 %s149_s0, 4  ;;  %vm56_vm1 = vcmask 253952   ;;  %s65_s1 = int_to_ptr.vmem [resolvable:$true] %s64_s1 }
  0x1b   :  { %s121_s19 = scalar_lea.vmem %s65_s1, 16  ;;  %s125_s20 = scalar_lea.vmem %s65_s1, 32 }
  0x1c   :  { %77 = vlog2.f32 %v38_v1  ;;  %v42_v3 = vmax.f32 %v41_v2, 1e-10  ;;  %p122_p10 = scmp.ne.s32.totalorder %s65_s1, %s121_s19  ;;  %p126_p11 = scmp.lt.s32.totalorder %s65_s1, %s65_s1 }
  0x1d   :  { %p127_p12 = scmp.lt.s32.totalorder %s125_s20, %s121_s19 }
  0x1e   :  { %79 = vlog2.f32 %v42_v3 }
  0x1f   :  { %p128_p13 = por %p127_p12, %p126_p11 }
  0x21   :  { %p129_p0 = pnand %p128_p13, %p122_p10 }
  0x29   :  { %v78_v4 = vpop.eup %77 }
  0x2a   :  { %v40_v5 = vmul.f32 0.6931472, %v78_v4 }
  0x2b   :  { %v80_v6 = vpop.eup %79 }
  0x2c   :  { %v44_v7 = vmul.f32 0.6931472, %v80_v6 }
  0x2e   :  { %v45_v9 = vsub.f32 %v40_v5, %v44_v7 }
  0x30   :  { %v46_v10 = vmul.f32 %v45_v9, %v37_v8 }
  0x32   :  { %v47_v11 = vadd.f32 %v46_v10, %v44_v7 }
  0x34   :  { %v49_v12 = vsel %vm48_vm0, %v47_v11, 0.0 }
  0x35   :  { %v50_v13 = vrot.slane %v49_v12, 4 }
  0x37   :  { %v51_v14 = vadd.f32 %v50_v13, %v49_v12 }
  0x39   :  { %v52_v15 = vrot.slane %v51_v14, 2 }
  0x3b   :  { %v53_v16 = vadd.f32 %v52_v15, %v51_v14 }
  0x3d   :  { %v54_v17 = vrot.slane %v53_v16, 1 }
  0x3f   :  { %v55_v18 = vadd.f32 %v54_v17, %v53_v16 }
  0x41   :  { %57 = vst.msk [vmem:[#allocation7] sm:$0x1] %vm56_vm1, %v55_v18 }
  0x42   :  { %132 = shalt.err (!%p129_p0)
}
  0x43   :  { %67 = dma.vmem_to_hbm [thread:$0]  %s65_s1, 16, %s176_s2, [#allocation4]  }
  0x44   :  { %145 = dma.done.wait [#allocation4], 16  }
  0x45   :  { %146 = vsyncadd [#allocation4], 4294967280 }
  0x46   :  { %71 = vsyncpa [#allocation3], 1 }
  0x47   :  { %72 = vsyncpa [#allocation6], 1 }
  0x48   :  { %73 = vsyncpa [#allocation4], 1 }

</bundles_post_ra>
